<compile_context>
chip_gen: v5e
topology: v5e:2x2
jax: 0.10.0
libtpu: 0.0.40
codegen_flags: <defaults>
</compile_context>

<pallas_src>
import jax
import jax.numpy as jnp
from jax.experimental import pallas as pl
from jax.experimental.pallas import tpu as pltpu

EMBEDDING_SIZE = 16
HIDDEN_SIZE = 64

# Synthetic vocab sizes (the original code derives these from joblib label
# encoders; we pick small deterministic sizes instead).
NUM_USERS = 64
NUM_ITEMS = 128


def _round_up(x, m):
    return ((x + m - 1) // m) * m


def ncf_kernel(uid_ref, iid_ref, w1f_ref, b1_ref, w2t_ref, b2_ref, w3_ref, b3_ref,
               out_ref):
    """Transposed NCF MLP: batch on the lane axis.

    uid_ref / iid_ref : (1, tile_b) int32   (item ids pre-offset by NUM_USERS)
    w1f_ref           : (HIDDEN, NUM_USERS + NUM_ITEMS)  fused (table @ w1).T
    b1_ref, b2_ref    : (HIDDEN, 1)
    w2t_ref           : (HIDDEN, HIDDEN)    (= w2.T)
    w3_ref            : (HIDDEN, 1)
    b3_ref            : (1, 1)
    out_ref           : (1, tile_b)
    """
    tile_b = uid_ref.shape[1]
    n_vocab = w1f_ref.shape[1]  # NUM_USERS + NUM_ITEMS

    uid = uid_ref[...]          # (1, tile_b)
    iid = iid_ref[...]          # (1, tile_b), already offset by NUM_USERS

    # Merged transposed one-hot over the concatenated user+item vocab axis.
    # User ids < NUM_USERS, item ids >= NUM_USERS, so the two matches never collide.
    vocab_iota = jax.lax.broadcasted_iota(jnp.int32, (n_vocab, tile_b), 0)
    onehot_t = ((vocab_iota == uid) | (vocab_iota == iid)).astype(w1f_ref.dtype)

    # h1_T = relu(W1_fused^T @ onehot_T + b1)   -> [HIDDEN, tile_b], N = tile_b
    h1 = jnp.dot(w1f_ref[...], onehot_t,
                 preferred_element_type=jnp.float32) + b1_ref[...]
    h1 = jnp.maximum(h1, 0.0)

    # h2_T = relu(W2^T @ h1_T + b2)             -> [HIDDEN, tile_b]
    h2 = jnp.dot(w2t_ref[...], h1.astype(w2t_ref.dtype),
                 preferred_element_type=jnp.float32) + b2_ref[...]
    h2 = jnp.maximum(h2, 0.0)

    # out_T = relu(w3^T @ h2_T + b3) done as a sublane reduction (XLU), MXU-free.
    out = jnp.sum(h2 * w3_ref[...], axis=0, keepdims=True) + b3_ref[...]
    out_ref[...] = jnp.maximum(out, 0.0).astype(out_ref.dtype)


def ncf_forward(user_ids, item_ids, params, *, tile_b=2048, use_bf16=False):
    """NCF forward: fused embedding + 3-layer MLP in one Pallas kernel (batch on lanes)."""
    user_tab, item_tab, w1, b1, w2, b2, w3, b3 = params
    n_users = user_tab.shape[0]

    batch = user_ids.shape[0]
    # Lane-axis tile: multiple of 128, no larger than needed for this batch.
    tile_b = max(128, _round_up(min(tile_b, _round_up(batch, 128)), 128))
    # Pad so the grid length is even (v7x megacore balance; harmless on v5e/v6e).
    bp = _round_up(batch, 2 * tile_b)
    pad = bp - batch

    uid = jnp.pad(user_ids.astype(jnp.int32), (0, pad)).reshape(1, bp)
    iid = (jnp.pad(item_ids.astype(jnp.int32), (0, pad)) + n_users).reshape(1, bp)

    # Fold the tiny embedding tables into fc1 (associativity; done once at trace time),
    # and transpose everything so the kernel is x-on-lanes throughout.
    w1_u = w1[:EMBEDDING_SIZE]                      # (16, 64)
    w1_i = w1[EMBEDDING_SIZE:]                      # (16, 64)
    fused_u = user_tab @ w1_u                       # (NUM_USERS, 64)
    fused_i = item_tab @ w1_i                       # (NUM_ITEMS, 64)
    w1_fused_t = jnp.concatenate([fused_u, fused_i], axis=0).T  # (64, NU+NI)
    w2_t = w2.T                                     # (64, 64)
    if use_bf16:
        # One-hot values (0/1) are exact in bf16; weights lose <=1 bf16 ulp.
        w1_fused_t = w1_fused_t.astype(jnp.bfloat16)
        w2_t = w2_t.astype(jnp.bfloat16)
    b1_col = b1.reshape(HIDDEN_SIZE, 1)
    b2_col = b2.reshape(HIDDEN_SIZE, 1)
    w3_col = w3.reshape(HIDDEN_SIZE, 1)
    b3_2d = b3.reshape(1, 1)

    grid = (bp // tile_b,)

    def lane_tiled():
        return pl.BlockSpec((1, tile_b), lambda i: (0, i))

    def resident(shape):
        return pl.BlockSpec(shape, lambda i: (0, 0))

    out = pl.pallas_call(
        ncf_kernel,
        out_shape=jax.ShapeDtypeStruct((1, bp), jnp.float32),
        grid_spec=pltpu.PrefetchScalarGridSpec(
            num_scalar_prefetch=0,
            grid=grid,
            in_specs=[
                lane_tiled(),                              # user ids   (1, tile_b)
                lane_tiled(),                              # item ids   (1, tile_b), offset
                resident(w1_fused_t.shape),                # fused layer-1 weight (64, 192)
                resident((HIDDEN_SIZE, 1)),                # b1
                resident((HIDDEN_SIZE, HIDDEN_SIZE)),      # w2.T
                resident((HIDDEN_SIZE, 1)),                # b2
                resident((HIDDEN_SIZE, 1)),                # w3 (column)
                resident((1, 1)),                          # b3
            ],
            out_specs=lane_tiled(),                        # lane-dense output (1, tile_b)
        ),
        compiler_params=pltpu.CompilerParams(
            dimension_semantics=("parallel",),
            vmem_limit_bytes=32 * 1024 * 1024),
    )(uid, iid, w1_fused_t, b1_col, w2_t, b2_col, w3_col, b3_2d)

    return out.reshape(bp, 1)[:batch]


def init_params(key):
    """Deterministic synthetic parameter init mirroring the module shapes."""
    ks = jax.random.split(key, 8)
    # nn.Embedding default: N(0, 1)
    user_emb = jax.random.normal(ks[0], (NUM_USERS, EMBEDDING_SIZE), jnp.float32)
    item_emb = jax.random.normal(ks[1], (NUM_ITEMS, EMBEDDING_SIZE), jnp.float32)

    def linear(kw, kb, fan_in, fan_out):
        bound = 1.0 / jnp.sqrt(fan_in)
        # Stored as [in, out] so the math is x @ W (PyTorch stores [out, in]).
        w = jax.random.uniform(kw, (fan_in, fan_out), jnp.float32, -bound, bound)
        bv = jax.random.uniform(kb, (1, fan_out), jnp.float32, -bound, bound)
        return w, bv

    w1, b1 = linear(ks[2], ks[3], EMBEDDING_SIZE * 2, HIDDEN_SIZE)
    w2, b2 = linear(ks[4], ks[5], HIDDEN_SIZE, HIDDEN_SIZE)
    w3, b3 = linear(ks[6], ks[7], HIDDEN_SIZE, 1)
    return (user_emb, item_emb, w1, b1, w2, b2, w3, b3)


if __name__ == "__main__":
    # TODO(synk): vocab sizes come from joblib label encoders in the original code;
    # synthetic sizes are used here since no files can be read.
    root = jax.random.PRNGKey(0)
    k_params, k_u, k_i = jax.random.split(root, 3)
    params = init_params(k_params)

    # Not a multiple of the tile -> exercises padding; tile_b=128 -> a 4-step grid.
    batch = 300
    user_ids = jax.random.randint(k_u, (batch,), 0, NUM_USERS, dtype=jnp.int32)
    item_ids = jax.random.randint(k_i, (batch,), 0, NUM_ITEMS, dtype=jnp.int32)

    # Small tile so this toy test runs several grid steps; production default is 2048.
    out = ncf_forward(user_ids, item_ids, params, tile_b=128)
    out = jax.block_until_ready(out)

    # Pure-JAX reference check (matches the PyTorch forward).
    ue = jnp.take(params[0], user_ids, axis=0)
    ie = jnp.take(params[1], item_ids, axis=0)
    cat = jnp.concatenate([ue, ie], axis=1)
    h1 = jnp.maximum(cat @ params[2] + params[3], 0.0)
    h2 = jnp.maximum(h1 @ params[4] + params[5], 0.0)
    ref = jnp.maximum(h2 @ params[6] + params[7], 0.0)
    assert out.shape == (batch, 1)
    assert jnp.allclose(out, ref, atol=1e-4, rtol=1e-4), "mismatch vs reference"

    print("KERNEL_OK")
</pallas_src>

<mosaic_0001>
module attributes {stable_mosaic.version = 11 : i64} {
  func.func @ncf_kernel(%arg0: i32, %arg1: memref<1x128xi32, #tpu.memory_space<vmem>>, %arg2: memref<1x128xi32, #tpu.memory_space<vmem>>, %arg3: memref<64x192xf32, #tpu.memory_space<vmem>>, %arg4: memref<64x1xf32, #tpu.memory_space<vmem>>, %arg5: memref<64x64xf32, #tpu.memory_space<vmem>>, %arg6: memref<64x1xf32, #tpu.memory_space<vmem>>, %arg7: memref<64x1xf32, #tpu.memory_space<vmem>>, %arg8: memref<1x1xf32, #tpu.memory_space<vmem>>, %arg9: memref<1x128xf32, #tpu.memory_space<vmem>>) attributes {dimension_semantics = [#tpu.dimension_semantics<parallel>], iteration_bounds = array<i64: 4>, scalar_prefetch = 0 : i64, scratch_operands = 0 : i64, tpu.core_type = #tpu.core_type<tc>, window_params = [{transform_indices = @transform_0, window_bounds = array<i64: 1, 128>}, {transform_indices = @transform_1, window_bounds = array<i64: 1, 128>}, {pipeline_mode = #tpu.pipeline_mode<synchronous>, transform_indices = @transform_2, window_bounds = array<i64: 64, 192>}, {pipeline_mode = #tpu.pipeline_mode<synchronous>, transform_indices = @transform_3, window_bounds = array<i64: 64, 1>}, {pipeline_mode = #tpu.pipeline_mode<synchronous>, transform_indices = @transform_4, window_bounds = array<i64: 64, 64>}, {pipeline_mode = #tpu.pipeline_mode<synchronous>, transform_indices = @transform_5, window_bounds = array<i64: 64, 1>}, {pipeline_mode = #tpu.pipeline_mode<synchronous>, transform_indices = @transform_6, window_bounds = array<i64: 64, 1>}, {pipeline_mode = #tpu.pipeline_mode<synchronous>, transform_indices = @transform_7, window_bounds = array<i64: 1, 1>}, {transform_indices = @transform_8, window_bounds = array<i64: 1, 128>}]} {
    %c0 = arith.constant 0 : index
    %c0_0 = arith.constant 0 : index
    %0 = vector.load %arg1[%c0, %c0_0] : memref<1x128xi32, #tpu.memory_space<vmem>>, vector<1x128xi32>
    %c0_1 = arith.constant 0 : index
    %c0_2 = arith.constant 0 : index
    %1 = vector.load %arg2[%c0_1, %c0_2] : memref<1x128xi32, #tpu.memory_space<vmem>>, vector<1x128xi32>
    %2 = tpu.iota {dimensions = array<i32: 0>} : vector<192x128xi32>
    %3 = vector.broadcast %0 : vector<1x128xi32> to vector<192x128xi32>
    %4 = arith.cmpi eq, %2, %3 : vector<192x128xi32>
    %5 = vector.broadcast %1 : vector<1x128xi32> to vector<192x128xi32>
    %6 = arith.cmpi eq, %2, %5 : vector<192x128xi32>
    %7 = arith.ori %4, %6 : vector<192x128xi1>
    %8 = arith.extui %7 : vector<192x128xi1> to vector<192x128xi32>
    %9 = arith.sitofp %8 : vector<192x128xi32> to vector<192x128xf32>
    %c0_3 = arith.constant 0 : index
    %c0_4 = arith.constant 0 : index
    %10 = vector.load %arg3[%c0_3, %c0_4] : memref<64x192xf32, #tpu.memory_space<vmem>>, vector<64x192xf32>
    %cst = arith.constant dense<0.000000e+00> : vector<64x128xf32>
    %11 = tpu.matmul %10, %9, %cst {dimension_numbers = #tpu.dot_dimension_numbers<[1], [0], [0], [1], [0, 0, 1, 1], [], []>} : vector<64x192xf32>, vector<192x128xf32>, vector<64x128xf32> -> vector<64x128xf32>
    %c0_5 = arith.constant 0 : index
    %c0_6 = arith.constant 0 : index
    %12 = vector.load %arg4[%c0_5, %c0_6] : memref<64x1xf32, #tpu.memory_space<vmem>>, vector<64x1xf32>
    %13 = vector.broadcast %12 : vector<64x1xf32> to vector<64x128xf32>
    %14 = arith.addf %11, %13 : vector<64x128xf32>
    %cst_7 = arith.constant 0.000000e+00 : f32
    %15 = vector.broadcast %cst_7 : f32 to vector<64x128xf32>
    %16 = arith.maximumf %14, %15 : vector<64x128xf32>
    %c0_8 = arith.constant 0 : index
    %c0_9 = arith.constant 0 : index
    %17 = vector.load %arg5[%c0_8, %c0_9] : memref<64x64xf32, #tpu.memory_space<vmem>>, vector<64x64xf32>
    %cst_10 = arith.constant dense<0.000000e+00> : vector<64x128xf32>
    %18 = tpu.matmul %17, %16, %cst_10 {dimension_numbers = #tpu.dot_dimension_numbers<[1], [0], [0], [1], [0, 0, 1, 1], [], []>} : vector<64x64xf32>, vector<64x128xf32>, vector<64x128xf32> -> vector<64x128xf32>
    %c0_11 = arith.constant 0 : index
    %c0_12 = arith.constant 0 : index
    %19 = vector.load %arg6[%c0_11, %c0_12] : memref<64x1xf32, #tpu.memory_space<vmem>>, vector<64x1xf32>
    %20 = vector.broadcast %19 : vector<64x1xf32> to vector<64x128xf32>
    %21 = arith.addf %18, %20 : vector<64x128xf32>
    %cst_13 = arith.constant 0.000000e+00 : f32
    %22 = vector.broadcast %cst_13 : f32 to vector<64x128xf32>
    %23 = arith.maximumf %21, %22 : vector<64x128xf32>
    %c0_14 = arith.constant 0 : index
    %c0_15 = arith.constant 0 : index
    %24 = vector.load %arg7[%c0_14, %c0_15] : memref<64x1xf32, #tpu.memory_space<vmem>>, vector<64x1xf32>
    %25 = vector.broadcast %24 : vector<64x1xf32> to vector<64x128xf32>
    %26 = arith.mulf %23, %25 : vector<64x128xf32>
    %cst_16 = arith.constant dense<0.000000e+00> : vector<128xf32>
    %27 = vector.multi_reduction <add>, %26, %cst_16 [0] : vector<64x128xf32> to vector<128xf32>
    %28 = vector.shape_cast %27 : vector<128xf32> to vector<1x128xf32>
    %c0_17 = arith.constant 0 : index
    %c0_18 = arith.constant 0 : index
    %29 = vector.load %arg8[%c0_17, %c0_18] : memref<1x1xf32, #tpu.memory_space<vmem>>, vector<1x1xf32>
    %30 = vector.broadcast %29 : vector<1x1xf32> to vector<1x128xf32>
    %31 = arith.addf %28, %30 : vector<1x128xf32>
    %cst_19 = arith.constant 0.000000e+00 : f32
    %32 = vector.broadcast %cst_19 : f32 to vector<1x128xf32>
    %33 = arith.maximumf %31, %32 : vector<1x128xf32>
    %c0_20 = arith.constant 0 : index
    %c0_21 = arith.constant 0 : index
    %34 = vector.load %arg9[%c0_20, %c0_21] : memref<1x128xf32, #tpu.memory_space<vmem>>, vector<1x128xf32>
    tpu.vector_store %arg9[%c0_20, %c0_21], %33 {strides = array<i32>} : memref<1x128xf32, #tpu.memory_space<vmem>>, vector<1x128xf32>,
    return
  }
  func.func @transform_0(%arg0: i32) -> (i32, i32) {
    %c0_i32 = arith.constant 0 : i32
    %c0_i32_0 = arith.constant 0 : i32
    return %c0_i32, %arg0 : i32, i32
  }
  func.func @transform_1(%arg0: i32) -> (i32, i32) {
    %c0_i32 = arith.constant 0 : i32
    %c0_i32_0 = arith.constant 0 : i32
    return %c0_i32, %arg0 : i32, i32
  }
  func.func @transform_2(%arg0: i32) -> (i32, i32) {
    %c0_i32 = arith.constant 0 : i32
    %c0_i32_0 = arith.constant 0 : i32
    %c0_i32_1 = arith.constant 0 : i32
    return %c0_i32, %c0_i32_0 : i32, i32
  }
  func.func @transform_3(%arg0: i32) -> (i32, i32) {
    %c0_i32 = arith.constant 0 : i32
    %c0_i32_0 = arith.constant 0 : i32
    %c0_i32_1 = arith.constant 0 : i32
    return %c0_i32, %c0_i32_0 : i32, i32
  }
  func.func @transform_4(%arg0: i32) -> (i32, i32) {
    %c0_i32 = arith.constant 0 : i32
    %c0_i32_0 = arith.constant 0 : i32
    %c0_i32_1 = arith.constant 0 : i32
    return %c0_i32, %c0_i32_0 : i32, i32
  }
  func.func @transform_5(%arg0: i32) -> (i32, i32) {
    %c0_i32 = arith.constant 0 : i32
    %c0_i32_0 = arith.constant 0 : i32
    %c0_i32_1 = arith.constant 0 : i32
    return %c0_i32, %c0_i32_0 : i32, i32
  }
  func.func @transform_6(%arg0: i32) -> (i32, i32) {
    %c0_i32 = arith.constant 0 : i32
    %c0_i32_0 = arith.constant 0 : i32
    %c0_i32_1 = arith.constant 0 : i32
    return %c0_i32, %c0_i32_0 : i32, i32
  }
  func.func @transform_7(%arg0: i32) -> (i32, i32) {
    %c0_i32 = arith.constant 0 : i32
    %c0_i32_0 = arith.constant 0 : i32
    %c0_i32_1 = arith.constant 0 : i32
    return %c0_i32, %c0_i32_0 : i32, i32
  }
  func.func @transform_8(%arg0: i32) -> (i32, i32) {
    %c0_i32 = arith.constant 0 : i32
    %c0_i32_0 = arith.constant 0 : i32
    return %c0_i32, %arg0 : i32, i32
  }
}

</mosaic_0001>

<bundles_post_ra>
// kernel: tpu_custom_call.1
= control target key start
LH: loop header
LB: loop body
LE: loop exit
PB: predicated region body
PF: predicated region fallthrough
CT: control target
= control target key end

     0   :  { %s1888_s0 = inlined_call_operand.hbm [shape: s32[1,512], index: 0, kind: input, shape index: {}]   ;;  %s1889_s1 = inlined_call_operand.hbm [shape: s32[1,512], index: 1, kind: input, shape index: {}]   ;;  %s1890_s2 = inlined_call_operand.vmem [shape: f32[64,192], index: 2, kind: input, shape index: {}]   ;;  %s1891_s3 = inlined_call_operand.vmem [shape: f32[64,1], index: 3, kind: input, shape index: {}]   ;;  %s1892_s4 = inlined_call_operand.vmem [shape: f32[64,64], index: 4, kind: input, shape index: {}]   ;;  %s1893_s5 = inlined_call_operand.vmem [shape: f32[64,1], index: 5, kind: input, shape index: {}]   ;;  %s1894_s6 = inlined_call_operand.vmem [shape: f32[64,1], index: 6, kind: input, shape index: {}]   ;;  %s1895_s7 = inlined_call_operand.<no memory space> [shape: f32[1,1], index: 7, kind: input, shape index: {}]   ;;  %s1896_s8 = inlined_call_operand.hbm [shape: f32[1,512], index: 8, kind: output, shape index: {}]  }
   0x1   :  { %1901 = sst [smem:[#allocation13_spill]] %s1888_s0  ;;  %v13_v0 = vstv %s1895_s7 }
   0x2   :  { %14 = vst [vmem:[#allocation2] sm:$0x1] %v13_v0 }
   0x3   :  { %15 = vsyncpa [#allocation4], 0 }
   0x4   :  { %17 = vsyncpa [#allocation4 + $0x1], 0 }
   0x5   :  { %18 = vsyncpa [#allocation7], 0 }
   0x6   :  { %20 = vsyncpa [#allocation7 + $0x1], 0 }
   0x7   :  { %21 = vsyncpa [#allocation5], 0 }
   0x8   :  { %23 = vsyncpa [#allocation5 + $0x1], 0  ;;  %s1319_s29 = smov 0   ;;  %s1321_s30 = smov 0  }
   0x9   :  { %s1323_s9 = smov 0   ;;  %s1325_s10 = smov 0  }
   0xa LB: > { %s1340_s7 = sadd.s32 4294967295, %s1267_s10   ;;  %s985_s11 = sadd.s32 4294967294, %s1267_s10   ;;  %s1267_s10 = sphi %s1325_s10, %s1937_s10   ;;  %s1263_s9 = sphi %s1323_s9, %s1936_s9   ;;  %s1259_s30 = sphi %s1321_s30, %s1935_s30   ;;  %s1255_s29 = sphi %s1319_s29, %s1934_s29  }
   0xb   : > { %s1344_s12 = sadd.s32 1, %s1267_s10   ;;  %s36_s13 = sadd.s32 1, %s1263_s9 }
   0xc   : > { %s33_s14 = ssub.s32 %s1267_s10, %s1344_s12  ;;  %p43_p0 = scmp.ne.s32.totalorder %s1263_s9, %s1259_s30 }
   0xd   : > { %p34_p1 = scmp.eq.s32.totalorder %s33_s14, 0  ;;  %p44_p2 = scmp.eq.s32.totalorder %s1267_s10, 0 }
   0xe   : > { %p49_p3 = scmp.ne.s32.totalorder %s1259_s30, %s1255_s29  ;;  %p50_p4 = scmp.eq.s32.totalorder %s1340_s7, 0 }
   0xf   : > { %s1356_s15 = scalar_select %p34_p1, %s1263_s9, %s36_s13  }
  0x10   : > { %p1358_p5 = por %p44_p2, %p43_p0  ;;  %p1362_p6 = por %p50_p4, %p49_p3 }
  0x11   : > { %1902 = sst [smem:[#allocation12_spill]] %s1356_s15  ;;  %p225_p7 = scmp.eq.s32.totalorder %s1340_s7, 3 }
  0x12   : > { %p231_p8 = scmp.eq.s32.totalorder %s985_s11, 3  ;;  %p1096_p9 = scmp.lt.s32.totalorder %s1267_s10, 4 }
  0x13   : > { %p1368_p10 = por %p225_p7, %p43_p0  ;;  %s1377_s20 = sand.u32 1, %s1263_s9  }
  0x14   : > { %p1372_p11 = por %p231_p8, %p49_p3  ;;  %s1907_s0 = sld [smem:[#allocation13_spill]] }
  0x15   : > { %s272_s25 = scalar_lea.vmem [#allocation3], %s1377_s20  ;;  %p1386_p12 = pnand %p1096_p9, %p1358_p5 }
  0x16   : > { %s279_s26 = sshll.u32 %s272_s25, 4  ;;  %p988_p13 = scmp.ge.s32.totalorder %s1267_s10, 1  ;;  %s280_s26 = int_to_ptr.vmem [resolvable:$true] %s279_s26 }
  0x17   : > { %p301_p0 = scmp.lt.s32.totalorder %s1267_s10, 5  ;;  %s270_s28 = scalar_lea.sflag [#allocation4], %s1377_s20 }
  0x18   : > { %p1141_p2 = pneg %p1386_p12 }
  0x1a   : > { %s275_s23 = scalar_lea.hbm %s1907_s0, %s1267_s10  ;;  %s1144_s21 = scalar_lea.hbm %s1907_s0, 4 }
  0x1b   : > { %s277_s24 = sshll.u32 %s275_s23, 4  ;;  %s278_s24 = int_to_ptr.hbm [resolvable:$true] %s277_s24 }
  0x1c   : > { %s1137_s11 = sshra.s32 %s278_s24, 4  ;;  %s1138_s11 = int_to_ptr.hbm [resolvable:$true] %s1137_s11 }
  0x1d   : > { %s1139_s13 = scalar_lea.hbm %s1138_s11, 1  ;;  %p1145_p5 = scmp.lt.s32.totalorder %s1138_s11, %s1907_s0 }
  0x1e   : > { %p1140_p1 = scmp.ne.s32.totalorder %s1138_s11, %s1139_s13  ;;  %p1146_p7 = scmp.lt.s32.totalorder %s1144_s21, %s1139_s13 }
  0x20   : > { %p1142_p3 = pnand %p1141_p2, %p1140_p1  ;;  %p1147_p8 = por %p1146_p7, %p1145_p5 }
  0x22   : > { %p1143_p4 = pneg %p1142_p3 }
  0x24   : > { %p1148_p9 = pnand %p1147_p8, %p1143_p4 }
  0x26   : > { %1151 = shalt.err (!%p1148_p9)
}
  0x27   : > { %1088 = dma.hbm_to_vmem [thread:$0]  (!%p1386_p12), %s278_s24, 16, %s280_s26, %s270_s28  }
  0x28   : > { %p1410_p1 = pnand %p988_p13, %p301_p0  ;;  %s292_s14 = scalar_lea.hbm %s1889_s1, %s1267_s10 }
  0x29   : > { %s294_s16 = sshll.u32 %s292_s14, 4  ;;  %s289_s21 = scalar_lea.vmem [#allocation6], %s1377_s20  ;;  %s295_s16 = int_to_ptr.hbm [resolvable:$true] %s294_s16 }
  0x2a   : > { %s296_s22 = sshll.u32 %s289_s21, 4  ;;  %s287_s23 = scalar_lea.sflag [#allocation7], %s1377_s20  ;;  %s297_s22 = int_to_ptr.vmem [resolvable:$true] %s296_s22 }
  0x2b   : > { %s1167_s0 = sshra.s32 %s295_s16, 4  ;;  %s1174_s28 = scalar_lea.hbm %s1889_s1, 4  ;;  %s1168_s0 = int_to_ptr.hbm [resolvable:$true] %s1167_s0 }
  0x2c   : > { %s1169_s15 = scalar_lea.hbm %s1168_s0, 1  ;;  %p1175_p4 = scmp.lt.s32.totalorder %s1168_s0, %s1889_s1 }
  0x2d   : > { %p1170_p3 = scmp.ne.s32.totalorder %s1168_s0, %s1169_s15  ;;  %p1176_p5 = scmp.lt.s32.totalorder %s1174_s28, %s1169_s15 }
  0x2f   : > { %p1172_p13 = pnand %p1170_p3, %p1141_p2  ;;  %p1177_p7 = por %p1176_p5, %p1175_p4 }
  0x31   : > { %p1173_p0 = pneg %p1172_p13 }
  0x33   : > { %p1178_p8 = pnand %p1177_p7, %p1173_p0 }
  0x35   : > { %1181 = shalt.err (!%p1178_p8)
}
  0x36   : > { %1091 = dma.hbm_to_vmem [thread:$0]  (!%p1386_p12), %s295_s16, 16, %s297_s22, %s287_s23  }
  0x37   : > { %305 = sbr.rel (%p1410_p1) target bundleno = 493 (0x1ed), region = 52  ;;  %s1434_s20 = sand.u32 (!%p1410_p1), 1, %s1259_s30  }
  0x38   : > { %s308_s14 = scalar_lea.sflag (!%p1410_p1), [#allocation4], %s1434_s20  ;;  %s310_s21 = scalar_lea.vmem (!%p1410_p1), [#allocation3], %s1434_s20 }
  0x3c   : > { %1242 = dma.done.wait (%p1362_p6), %s308_s14, 16  }
  0x3d   : > { %1244 = vsyncadd (%p1362_p6), %s308_s14, 4294967280  ;;  %s317_s0 = scalar_lea.sflag [#allocation7], %s1434_s20  ;;  %s319_s15 = scalar_lea.vmem [#allocation6], %s1434_s20 }
  0x3e   : > { %1246 = dma.done.wait (%p1362_p6), %s317_s0, 16  }
  0x3f   : > { %1248 = vsyncadd (%p1362_p6), %s317_s0, 4294967280  ;;  %v357_v1 = vlaneseq  ;;  %v1269_v2 = vmov 0   ;;  %v527_v7 = vld [vmem:[%s1891_s3 + $0x38] sm:$0xff]  ;;  %v1457_v9 = vld [vmem:[%s310_s21] ss:$0 sm:$0xff]  ;;  %v1270_v16 = vmov 1.0   ;;  %s900_s28 = scalar_lea.hbm %s1896_s8, %s1340_s7 }
  0x40   : > { %1132 = vset.pattern.permute.xlu0 %v1269_v2  ;;  %1133 = vset.pattern.permute.xlu1 %v1269_v2  ;;  %v1459_v10 = vld [vmem:[%s319_s15] ss:$0 sm:$0xff]  ;;  %v525_v15 = vld [vmem:[%s1891_s3 + $0x28] sm:$0xff]  ;;  %v526_v21 = vld [vmem:[%s1891_s3 + $0x30] sm:$0xff]  ;;  %v1918_v31 = vmov 0  ;;  %v1920_v34 = vmov 0 }
  0x41   : > { %v1448_v3 = vshrl.u32 %v357_v1, 7  ;;  %1134 = vset.pattern.permute.xlu2 %v1269_v2  ;;  %565 = vperm.xlu0 %1132, %v527_v7   ;;  %v524_v29 = vld [vmem:[%s1891_s3 + $0x20] sm:$0xff]  ;;  %v521_v35 = vld [vmem:[%s1891_s3 + $0x8] sm:$0xff]  ;;  %v1922_v37 = vmov 0  ;;  %v523_v39 = vld [vmem:[%s1891_s3 + $0x18] sm:$0xff]  ;;  %v1925_v41 = vmov 0 }
  0x42   : > { %555 = vperm.xlu1 %1133, %v525_v15   ;;  %v505_v40 = vld [vmem:[%s1890_s2 + $0x8] sm:$0xff]  ;;  %v520_v43 = vld [vmem:[%s1891_s3] sm:$0xff]  ;;  %545 = vperm.xlu2 %1134, %v523_v39   ;;  %v522_v47 = vld [vmem:[%s1891_s3 + $0x10] sm:$0xff]  ;;  %s354_s11 = scalar_lea.vmem [#allocation8], %s1434_s20  ;;  %s904_s14 = sshll.u32 %s900_s28, 4  ;;  %s905_s14 = int_to_ptr.hbm [resolvable:$true] %s904_s14 }
  0x43   : > { %v373_v4 = vadd.s32 120, %v1448_v3  ;;  %v381_v5 = vadd.s32 184, %v1448_v3  ;;  %v372_v6 = vadd.s32 112, %v1448_v3  ;;  %v380_v8 = vadd.s32 176, %v1448_v3  ;;  %v692_v45 = vld [vmem:[%s1893_s5 + $0x8] sm:$0xff]  ;;  %v507_v48 = vld [vmem:[%s1890_s2 + $0x18] sm:$0xff] }
  0x44   : > { %v371_v11 = vadd.s32 104, %v1448_v3  ;;  %v379_v12 = vadd.s32 168, %v1448_v3  ;;  %v370_v13 = vadd.s32 96, %v1448_v3  ;;  %v378_v14 = vadd.s32 160, %v1448_v3  ;;  %v693_v49 = vld [vmem:[%s1893_s5 + $0x10] sm:$0xff]  ;;  %v695_v50 = vld [vmem:[%s1893_s5 + $0x20] sm:$0xff] }
  0x45   : > { %vm398_vm0 = vcmp.eq.s32.totalorder %v373_v4, %v1457_v9  ;;  %vm423_vm1 = vcmp.eq.s32.totalorder %v373_v4, %v1459_v10  ;;  %vm406_vm2 = vcmp.eq.s32.totalorder %v381_v5, %v1457_v9  ;;  %vm431_vm3 = vcmp.eq.s32.totalorder %v381_v5, %v1459_v10  ;;  %v504_v51 = vld [vmem:[%s1890_s2] sm:$0xff]  ;;  %v514_v52 = vld [vmem:[%s1890_s2 + $0x50] sm:$0xff]  ;;  %v509_v53 = vld [vmem:[%s1890_s2 + $0x28] sm:$0xff]  ;;  %s902_s13 = sshll.u32 %s354_s11, 4  ;;  %s892_s21 = scalar_lea.sflag [#allocation5], %s1434_s20  ;;  %s903_s13 = int_to_ptr.vmem [resolvable:$true] %s902_s13 }
  0x46   : > { %vm447_vm4 = vmor %vm398_vm0, %vm423_vm1  ;;  %vm397_vm5 = vcmp.eq.s32.totalorder %v372_v6, %v1457_v9  ;;  %vm422_vm6 = vcmp.eq.s32.totalorder %v372_v6, %v1459_v10  ;;  %vm405_vm7 = vcmp.eq.s32.totalorder %v380_v8, %v1457_v9  ;;  %vm430_vm8 = vcmp.eq.s32.totalorder %v380_v8, %v1459_v10  ;;  %v812_v54 = vld [vmem:[%s1894_s6] sm:$0xff]  ;;  %v814_v56 = vld [vmem:[%s1894_s6 + $0x10] sm:$0xff]  ;;  %s1211_s0 = sshra.s32 %s905_s14, 4  ;;  %s1217_s25 = scalar_lea.hbm %s1896_s8, 4  ;;  %s1212_s0 = int_to_ptr.hbm [resolvable:$true] %s1211_s0 }
  0x47   : > { %1013 = vmatpush.msk.msra.mxu0 %vm447_vm4, %v1270_v16  ;;  %1055 = vmatpush.msk.msra.mxu3 %vm447_vm4, %v1270_v16  ;;  %vm1478_vm9 = vmor %vm406_vm2, %vm431_vm3  ;;  %vm396_vm10 = vcmp.eq.s32.totalorder %v371_v11, %v1457_v9  ;;  %vm421_vm11 = vcmp.eq.s32.totalorder %v371_v11, %v1459_v10  ;;  %v369_v18 = vadd.s32 88, %v1448_v3  ;;  %vm404_vm13 = vcmp.eq.s32.totalorder %v379_v12, %v1457_v9  ;;  %v691_v55 = vld [vmem:[%s1893_s5] sm:$0xff]  ;;  %v506_v57 = vld [vmem:[%s1890_s2 + $0x10] sm:$0xff]  ;;  %s1213_s15 = scalar_lea.hbm %s1212_s0, 1  ;;  %p1218_p9 = scmp.lt.s32.totalorder %s1212_s0, %s1896_s8 }
  0x48   : > { %1029 = vmatpush.msk.msra.mxu1 %vm1478_vm9, %v1270_v16  ;;  %vm446_vm12 = vmor %vm397_vm5, %vm422_vm6  ;;  %vm429_vm14 = vcmp.eq.s32.totalorder %v379_v12, %v1459_v10  ;;  %v377_v19 = vadd.s32 152, %v1448_v3  ;;  %vm395_vm0 = vcmp.eq.s32.totalorder %v370_v13, %v1457_v9  ;;  %vm420_vm1 = vcmp.eq.s32.totalorder %v370_v13, %v1459_v10  ;;  %v516_v58 = vld [vmem:[%s1890_s2 + $0x60] sm:$0xff]  ;;  %v511_v59 = vld [vmem:[%s1890_s2 + $0x38] sm:$0xff]  ;;  %p1214_p6 = scmp.ne.s32.totalorder %s1212_s0, %s1213_s15  ;;  %p1219_p1 = scmp.lt.s32.totalorder %s1217_s25, %s1213_s15 }
  0x49   : > { %1014 = vmatpush.msk.msra.mxu0 %vm446_vm12, %v1270_v16  ;;  %1056 = vmatpush.msk.msra.mxu3 %vm446_vm12, %v1270_v16  ;;  %vm1497_vm15 = vmor %vm405_vm7, %vm430_vm8  ;;  %v368_v22 = vadd.s32 80, %v1448_v3  ;;  %vm403_vm3 = vcmp.eq.s32.totalorder %v378_v14, %v1457_v9  ;;  %vm428_vm4 = vcmp.eq.s32.totalorder %v378_v14, %v1459_v10  ;;  %v376_v23 = vadd.s32 144, %v1448_v3  ;;  %v696_v60 = vld [vmem:[%s1893_s5 + $0x28] sm:$0xff]  ;;  %v694_v61 = vld [vmem:[%s1893_s5 + $0x18] sm:$0xff] }
  0x4a   : > { %1030 = vmatpush.msk.msra.mxu1 %vm1497_vm15, %v1270_v16  ;;  %vm445_vm2 = vmor %vm396_vm10, %vm421_vm11  ;;  %vm394_vm6 = vcmp.eq.s32.totalorder %v369_v18, %v1457_v9  ;;  %vm419_vm7 = vcmp.eq.s32.totalorder %v369_v18, %v1459_v10  ;;  %v367_v25 = vadd.s32 72, %v1448_v3  ;;  %560 = vperm.xlu0 %1132, %v526_v21   ;;  %vm402_vm10 = vcmp.eq.s32.totalorder %v377_v19, %v1457_v9  ;;  %v697_v62 = vld [vmem:[%s1893_s5 + $0x30] sm:$0xff]  ;;  %v508_v63 = vld [vmem:[%s1890_s2 + $0x20] sm:$0xff]  ;;  %p1215_p12 = pnand %p1214_p6, %p1368_p10  ;;  %p1220_p3 = por %p1219_p1, %p1218_p9 }
  0x4b   : > { %1015 = vmatpush.msk.msra.mxu0 %vm445_vm2, %v1270_v16  ;;  %1057 = vmatpush.msk.msra.mxu3 %vm445_vm2, %v1270_v16  ;;  %vm1523_vm5 = vmor %vm404_vm13, %vm429_vm14  ;;  %vm427_vm11 = vcmp.eq.s32.totalorder %v377_v19, %v1459_v10  ;;  %v375_v26 = vadd.s32 136, %v1448_v3  ;;  %vm393_vm13 = vcmp.eq.s32.totalorder %v368_v22, %v1457_v9  ;;  %vm418_vm14 = vcmp.eq.s32.totalorder %v368_v22, %v1459_v10  ;;  %v518_v0 = vld [vmem:[%s1890_s2 + $0x70] sm:$0xff]  ;;  %v513_v1 = vld [vmem:[%s1890_s2 + $0x48] sm:$0xff] }
  0x4c   : > { %1031 = vmatpush.msk.msra.mxu1 %vm1523_vm5, %v1270_v16  ;;  %vm444_vm8 = vmor %vm395_vm0, %vm420_vm1  ;;  %v366_v28 = vadd.s32 64, %v1448_v3  ;;  %vm401_vm1 = vcmp.eq.s32.totalorder %v376_v23, %v1457_v9  ;;  %vm426_vm2 = vcmp.eq.s32.totalorder %v376_v23, %v1459_v10  ;;  %v374_v30 = vadd.s32 128, %v1448_v3  ;;  %550 = vperm.xlu1 %1133, %v524_v29   ;;  %v816_v2 = vld [vmem:[%s1894_s6 + $0x20] sm:$0xff]  ;;  %v817_v4 = vld [vmem:[%s1894_s6 + $0x28] sm:$0xff]  ;;  %p1216_p2 = pneg %p1215_p12 }
  0x4d   : > { %1016 = vmatpush.msk.msra.mxu0 %vm444_vm8, %v1270_v16  ;;  %1058 = vmatpush.msk.msra.mxu3 %vm444_vm8, %v1270_v16  ;;  %vm1546_vm12 = vmor %vm403_vm3, %vm428_vm4  ;;  %vm392_vm4 = vcmp.eq.s32.totalorder %v367_v25, %v1457_v9  ;;  %v365_v32 = vadd.s32 56, %v1448_v3  ;;  %vm400_vm8 = vcmp.eq.s32.totalorder %v375_v26, %v1457_v9  ;;  %v364_v33 = vadd.s32 48, %v1448_v3  ;;  %v510_v5 = vld [vmem:[%s1890_s2 + $0x30] sm:$0xff]  ;;  %v515_v6 = vld [vmem:[%s1890_s2 + $0x58] sm:$0xff] }
  0x4e   : > { %1032 = vmatpush.msk.msra.mxu1 %vm1546_vm12, %v1270_v16  ;;  %vm443_vm0 = vmor %vm394_vm6, %vm419_vm7  ;;  %vm417_vm6 = vcmp.eq.s32.totalorder %v367_v25, %v1459_v10  ;;  %v363_v36 = vadd.s32 40, %v1448_v3  ;;  %v362_v38 = vadd.s32 32, %v1448_v3  ;;  %v361_v42 = vadd.s32 24, %v1448_v3  ;;  %540 = vperm.xlu2 %1134, %v522_v47   ;;  %v519_v7 = vld [vmem:[%s1890_s2 + $0x78] sm:$0xff]  ;;  %v818_v8 = vld [vmem:[%s1894_s6 + $0x30] sm:$0xff]  ;;  %p1221_p13 = pnand %p1220_p3, %p1216_p2 }
  0x4f   : > { %1017 = vmatpush.msk.msra.mxu0 %vm443_vm0, %v1270_v16  ;;  %1059 = vmatpush.msk.msra.mxu3 %vm443_vm0, %v1270_v16  ;;  %vm1572_vm3 = vmor %vm402_vm10, %vm427_vm11  ;;  %vm425_vm10 = vcmp.eq.s32.totalorder %v375_v26, %v1459_v10  ;;  %v360_v44 = vadd.s32 16, %v1448_v3  ;;  %v359_v46 = vadd.s32 8, %v1448_v3  ;;  %v512_v11 = vld [vmem:[%s1890_s2 + $0x40] sm:$0xff]  ;;  %v517_v12 = vld [vmem:[%s1890_s2 + $0x68] sm:$0xff] }
  0x50   : > { %v1919_v31 = vsel %vm1572_vm3, 4294967295, %v1918_v31  ;;  %1033 = vmatpush.msk.msra.mxu1 %vm1572_vm3, %v1270_v16  ;;  %vm442_vm7 = vmor %vm393_vm13, %vm418_vm14  ;;  %vm416_vm14 = vcmp.eq.s32.totalorder %v366_v28, %v1459_v10  ;;  %vm414_vm13 = vcmp.eq.s32.totalorder %v364_v33, %v1459_v10  ;;  %vm412_vm3 = vcmp.eq.s32.totalorder %v362_v38, %v1459_v10  ;;  %v698_v13 = vld [vmem:[%s1893_s5 + $0x38] sm:$0xff] }
  0x51   : > { %1018 = vmatpush.msk.msra.mxu0 %vm442_vm7, %v1270_v16  ;;  %1060 = vmatpush.msk.msra.mxu3 %vm442_vm7, %v1270_v16  ;;  %vm1595_vm11 = vmor %vm401_vm1, %vm426_vm2  ;;  %vm399_vm1 = vcmp.eq.s32.totalorder %v374_v30, %v1457_v9  ;;  %vm424_vm2 = vcmp.eq.s32.totalorder %v374_v30, %v1459_v10  ;;  %v819_v14 = vld [vmem:[%s1894_s6 + $0x38] sm:$0xff] }
  0x52   : > { %v1921_v34 = vsel %vm1595_vm11, 4294967295, %v1920_v34  ;;  %1034 = vmatpush.msk.msra.mxu1 %vm1595_vm11, %v1270_v16  ;;  %vm441_vm0 = vmor %vm392_vm4, %vm417_vm6  ;;  %vm1924_vm6 = vcmp.eq.s32.totalorder %v366_v28, %v1457_v9  ;;  %535 = vperm.xlu0 %1132, %v521_v35   ;;  %vm387_vm11 = vcmp.eq.s32.totalorder %v362_v38, %v1457_v9 }
  0x53   : > { %1019 = vmatpush.msk.msra.mxu0 %vm441_vm0, %v1270_v16  ;;  %1061 = vmatpush.msk.msra.mxu3 %vm441_vm0, %v1270_v16  ;;  %vm1620_vm7 = vmor %vm400_vm8, %vm425_vm10  ;;  %vm568_vm10 = vcmask 523264   ;;  %vm389_vm0 = vcmp.eq.s32.totalorder %v364_v33, %v1457_v9 }
  0x54   : > { %v1923_v37 = vsel %vm1620_vm7, 4294967295, %v1922_v37  ;;  %1035 = vmatpush.msk.msra.mxu1 %vm1620_vm7, %v1270_v16  ;;  %vm440_vm8 = vmor %vm1924_vm6, %vm416_vm14  ;;  %vm388_vm14 = vcmp.eq.s32.totalorder %v363_v36, %v1457_v9  ;;  %vm413_vm6 = vcmp.eq.s32.totalorder %v363_v36, %v1459_v10  ;;  %530 = vperm.xlu1 %1133, %v520_v43  }
  0x55   : > { %1020 = vmatpush.msk.msra.mxu0 %vm440_vm8, %v1270_v16  ;;  %1062 = vmatpush.msk.msra.mxu3 %vm440_vm8, %v1270_v16  ;;  %vm1648_vm4 = vmor %vm399_vm1, %vm424_vm2  ;;  %vm1927_vm8 = vcmp.eq.s32.totalorder %v365_v32, %v1459_v10  ;;  %vm1928_vm1 = vcmp.eq.s32.totalorder %v365_v32, %v1457_v9 }
  0x56   : > { %v1926_v41 = vsel %vm1648_vm4, 4294967295, %v1925_v41  ;;  %1036 = vmatpush.msk.msra.mxu1 %vm1648_vm4, %v1270_v16  ;;  %vm439_vm2 = vmor %vm1928_vm1, %vm1927_vm8  ;;  %vm386_vm8 = vcmp.eq.s32.totalorder %v361_v42, %v1457_v9  ;;  %701 = vperm.xlu2 %1134, %v691_v55  }
  0x57   : > { %1037 = vmatmul.msk.f32.vlgmr.msra.gmra.mxu1 %vm568_vm10, %v505_v40  ;;  %1021 = vmatpush.msk.msra.mxu0 %vm439_vm2, %v1270_v16  ;;  %vm438_vm7 = vmor %vm389_vm0, %vm414_vm13  ;;  %vm411_vm13 = vcmp.eq.s32.totalorder %v361_v42, %v1459_v10 }
  0x58   : > { %1063 = vmatpush.msk.msra.mxu3 %vm439_vm2, %v1270_v16  ;;  %vm437_vm4 = vmor %vm388_vm14, %vm413_vm6  ;;  %vm385_vm14 = vcmp.eq.s32.totalorder %v360_v44, %v1457_v9  ;;  %vm410_vm6 = vcmp.eq.s32.totalorder %v360_v44, %v1459_v10  ;;  %vm408_vm2 = vcmp.eq.s32.totalorder %v1448_v3, %v1459_v10 }
  0x59   : > { %1022 = vmatpush.msk.msra.mxu0 %vm438_vm7, %v1270_v16  ;;  %vm436_vm0 = vmor %vm387_vm11, %vm412_vm3  ;;  %vm384_vm3 = vcmp.eq.s32.totalorder %v359_v46, %v1457_v9  ;;  %vm409_vm11 = vcmp.eq.s32.totalorder %v359_v46, %v1459_v10  ;;  %v881_v10 = vld [vmem:[#allocation2] sm:$0x1] }
  0x5a   : > { %1064 = vmatpush.msk.msra.mxu3 %vm438_vm7, %v1270_v16  ;;  %706 = vperm.xlu0 %1132, %v692_v45   ;;  %vm435_vm1 = vmor %vm386_vm8, %vm411_vm13 }
  0x5b   : > { %1023 = vmatpush.msk.msra.mxu0 %vm437_vm4, %v1270_v16  ;;  %vm434_vm7 = vmor %vm385_vm14, %vm410_vm6 }
  0x5c   : > { %1065 = vmatpush.msk.msra.mxu3 %vm437_vm4, %v1270_v16  ;;  %vm383_vm4 = vcmp.eq.s32.totalorder %v1448_v3, %v1457_v9  ;;  %vm433_vm8 = vmor %vm384_vm3, %vm409_vm11  ;;  %711 = vperm.xlu1 %1133, %v693_v49   ;;  %v813_v3 = vld [vmem:[%s1894_s6 + $0x8] sm:$0xff]  ;;  %v815_v9 = vld [vmem:[%s1894_s6 + $0x18] sm:$0xff] }
  0x5d   : > { %1024 = vmatpush.msk.msra.mxu0 %vm436_vm0, %v1270_v16  ;;  %vm432_vm13 = vmor %vm383_vm4, %vm408_vm2 }
  0x5e   : > { %1066 = vmatpush.msk.msra.mxu3 %vm436_vm0, %v1270_v16  ;;  %716 = vperm.xlu2 %1134, %v694_v61  }
  0x5f   : > { %1038 = vmatmul.msk.f32.gmra.mxu1 %vm568_vm10, %v507_v48  ;;  %1025 = vmatpush.msk.msra.mxu0 %vm435_vm1, %v1270_v16 }
  0x60   : > { %1067 = vmatpush.msk.msra.mxu3 %vm435_vm1, %v1270_v16 }
  0x61   : > { %1026 = vmatpush.msk.msra.mxu0 %vm434_vm7, %v1270_v16 }
  0x62   : > { %1068 = vmatpush.msk.msra.mxu3 %vm434_vm7, %v1270_v16  ;;  %721 = vperm.xlu0 %1132, %v695_v50  }
  0x63   : > { %1027 = vmatpush.msk.msra.mxu0 %vm433_vm8, %v1270_v16 }
  0x64   : > { %1069 = vmatpush.msk.msra.mxu3 %vm433_vm8, %v1270_v16  ;;  %822 = vperm.xlu1 %1133, %v812_v54  }
  0x65   : > { %1028 = vmatpush.msk.msra.mxu0 %vm432_vm13, %v1270_v16 }
  0x66   : > { %1070 = vmatpush.msk.msra.mxu3 %vm432_vm13, %v1270_v16  ;;  %609 = vmatmul.f32.vlgmr.msra.gmra.mxu0 %v504_v51 }
  0x67   : > { %624 = vmatmul.f32.vlgmr.msra.gmra.mxu3 %v514_v52  ;;  %1039 = vmatmul.msk.f32.gmra.mxu1 %vm568_vm10, %v509_v53 }
  0x68   : > { %1071 = vmatpush.msk.msrb.mxu3 %vm1478_vm9, %v1270_v16  ;;  %vm1929_vm9 = vnez %v1919_v31  ;;  %827 = vperm.xlu2 %1134, %v813_v3   ;;  %v687_v3 = vld [vmem:[%s1892_s4 + $0x20] sm:$0xff] }
  0x6a   : > { %1072 = vmatpush.msk.msrb.mxu3 %vm1497_vm15, %v1270_v16  ;;  %832 = vperm.xlu0 %1132, %v814_v56   ;;  %vm1930_vm15 = vnez %v1921_v34 }
  0x6c   : > { %1073 = vmatpush.msk.msrb.mxu3 %vm1523_vm5, %v1270_v16  ;;  %726 = vperm.xlu1 %1133, %v696_v60   ;;  %vm1931_vm5 = vnez %v1923_v37 }
  0x6e   : > { %612 = vmatmul.f32.gmra.mxu0 %v506_v57  ;;  %1074 = vmatpush.msk.msrb.mxu3 %vm1546_vm12, %v1270_v16  ;;  %vm1932_vm12 = vnez %v1926_v41 }
  0x6f   : > { %627 = vmatmul.f32.gmra.mxu3 %v516_v58  ;;  %1040 = vmatmul.msk.f32.gmra.mxu1 %vm568_vm10, %v511_v59 }
  0x70   : > { %1075 = vmatpush.msk.msrb.mxu3 %vm1929_vm9, %v1270_v16  ;;  %837 = vperm.xlu2 %1134, %v815_v9  }
  0x72   : > { %1076 = vmatpush.msk.msrb.mxu3 %vm1930_vm15, %v1270_v16  ;;  %731 = vperm.xlu0 %1132, %v697_v62  }
  0x74   : > { %1077 = vmatpush.msk.msrb.mxu3 %vm1931_vm5, %v1270_v16  ;;  %842 = vperm.xlu1 %1133, %v816_v2   ;;  %v686_v2 = vld [vmem:[%s1892_s4 + $0x18] sm:$0xff] }
  0x76   : > { %615 = vmatmul.f32.gmra.mxu0 %v508_v63  ;;  %1078 = vmatpush.msk.msrb.mxu3 %vm1932_vm12, %v1270_v16  ;;  %v683_v63 = vld [vmem:[%s1892_s4] sm:$0xff] }
  0x77   : > { %630 = vmatmul.f32.gmra.mxu3 %v518_v0  ;;  %1041 = vmatmul.msk.f32.gmra.mxu1 %vm568_vm10, %v513_v1  ;;  %v684_v0 = vld [vmem:[%s1892_s4 + $0x8] sm:$0xff]  ;;  %v685_v1 = vld [vmem:[%s1892_s4 + $0x10] sm:$0xff] }
  0x78   : > { %736 = vperm.xlu2 %1134, %v698_v13  }
  0x7a   : > { %847 = vperm.xlu0 %1132, %v817_v4   ;;  %v688_v4 = vld [vmem:[%s1892_s4 + $0x28] sm:$0xff] }
  0x7c   : > { %852 = vperm.xlu1 %1133, %v818_v8  }
  0x7e   : > { %618 = vmatmul.f32.gmra.mxu0 %v510_v5  ;;  %v689_v5 = vld [vmem:[%s1892_s4 + $0x30] sm:$0xff] }
  0x7f   : > { %1042 = vmatmul.msk.f32.gmra.mxu1 %vm568_vm10, %v515_v6  ;;  %1044 = vmatmul.msk.f32.vlgmr.msrb.gmra.mxu3 %vm568_vm10, %v519_v7  ;;  %v690_v6 = vld [vmem:[%s1892_s4 + $0x38] sm:$0xff] }
  0x80   : > { %857 = vperm.xlu2 %1134, %v819_v14  }
  0x82   : > { %884 = vperm.xlu0 %1132, %v881_v10  }
  0x86   : > { %621 = vmatmul.f32.gmra.mxu0 %v512_v11 }
  0x87   : > { %1043 = vmatmul.msk.f32.gmra.mxu1 %vm568_vm10, %v517_v12 }
  0x9c   : > { %v546_v29 = vpop.permute.xlu2 %545 }
  0xa8   : > { %v541_v45 = vpop.permute.xlu2 %540 }
  0xb0   : > { %v702_v9 = vpop.permute.xlu2 %701 }
  0xb3   : > { %v566_v24 = vpop.permute.xlu0 %565 }
  0xb4   : > { %v556_v26 = vpop.permute.xlu1 %555 }
  0xb8   : > { %v717_v13 = vpop.permute.xlu2 %716 }
  0xbc   : > { %v561_v31 = vpop.permute.xlu0 %560 }
  0xbe   : > { %v551_v32 = vpop.permute.xlu1 %550 }
  0xc4   : > { %v536_v49 = vpop.permute.xlu0 %535 }
  0xc6   : > { %v531_v53 = vpop.permute.xlu1 %530 }
  0xcc   : > { %v707_v10 = vpop.permute.xlu0 %706 }
  0xce   : > { %v712_v11 = vpop.permute.xlu1 %711 }
  0xd4   : > { %v651_v15 = vpop.f32.mrf.mxu1  ;;  %v722_v14 = vpop.permute.xlu0 %721 }
  0xdc   : > { %v654_v16 = vpop.f32.mrf.mxu1 }
  0xe3   : > { %v610_v17 = vpop.f32.mrf.mxu0 }
  0xe4   : > { %v657_v18 = vpop.f32.mrf.mxu1  ;;  %v611_v54 = vadd.f32 %v610_v17, %v531_v53  ;;  %v828_v17 = vpop.permute.xlu2 %827 }
  0xe6   : > { %v652_v60 = vadd.f32 %v651_v15, %v611_v54 }
  0xe8   : > { %v675_v62 = vmax.f32 %v652_v60, 0.0 }
  0xea   : > { %v625_v19 = vpop.f32.mrf.mxu3 }
  0xeb   : > { %v613_v20 = vpop.f32.mrf.mxu0  ;;  %v626_v35 = vadd.f32 %v625_v19, %v556_v26  ;;  %v833_v19 = vpop.permute.xlu0 %832 }
  0xec   : > { %v660_v21 = vpop.f32.mrf.mxu1  ;;  %v614_v50 = vadd.f32 %v613_v20, %v536_v49 }
  0xee   : > { %v655_v58 = vadd.f32 %v654_v16, %v614_v50  ;;  %v823_v16 = vpop.permute.xlu1 %822 }
  0xf0   : > { %v676_v61 = vmax.f32 %v655_v58, 0.0 }
  0xf2   : > { %v628_v22 = vpop.f32.mrf.mxu3 }
  0xf3   : > { %v616_v23 = vpop.f32.mrf.mxu0  ;;  %v629_v36 = vadd.f32 %v628_v22, %v561_v31  ;;  %v838_v22 = vpop.permute.xlu2 %837 }
  0xf4   : > { %v663_v25 = vpop.f32.mrf.mxu1  ;;  %v617_v46 = vadd.f32 %v616_v23, %v541_v45 }
  0xf6   : > { %v658_v56 = vadd.f32 %v657_v18, %v617_v46  ;;  %v727_v20 = vpop.permute.xlu1 %726 }
  0xf8   : > { %v677_v59 = vmax.f32 %v658_v56, 0.0 }
  0xfa   : > { %v631_v27 = vpop.f32.mrf.mxu3 }
  0xfb   : > { %v619_v28 = vpop.f32.mrf.mxu0  ;;  %v632_v33 = vadd.f32 %v631_v27, %v566_v24 }
  0xfc   : > { %v666_v30 = vpop.f32.mrf.mxu1  ;;  %v620_v41 = vadd.f32 %v619_v28, %v546_v29  ;;  %v732_v28 = vpop.permute.xlu0 %731 }
  0xfd   : > { %v667_v42 = vadd.f32 %v666_v30, %v626_v35 }
  0xfe   : > { %v661_v52 = vadd.f32 %v660_v21, %v620_v41  ;;  %v737_v41 = vpop.permute.xlu2 %736 }
  0xff   : > { %v680_v51 = vmax.f32 %v667_v42, 0.0 }
 0x100   : > { %v678_v57 = vmax.f32 %v661_v52, 0.0 }
 0x102   : > { %v672_v34 = vpop.f32.mrf.mxu3 }
 0x103   : > { %v622_v37 = vpop.f32.mrf.mxu0  ;;  %v673_v38 = vadd.f32 %v672_v34, %v632_v33 }
 0x104   : > { %v623_v39 = vadd.f32 %v622_v37, %v551_v32  ;;  %v669_v40 = vpop.f32.mrf.mxu1  ;;  %v843_v32 = vpop.permute.xlu1 %842 }
 0x105   : > { %v670_v43 = vadd.f32 %v669_v40, %v629_v36  ;;  %v682_v44 = vmax.f32 %v673_v38, 0.0 }
 0x106   : > { %v664_v48 = vadd.f32 %v663_v25, %v623_v39  ;;  %v858_v58 = vpop.permute.xlu2 %857 }
 0x107   : > { %v681_v47 = vmax.f32 %v670_v43, 0.0  ;;  %771 = vmatpush.msra.mxu2 %v682_v44 }
 0x108   : > { %v679_v55 = vmax.f32 %v664_v48, 0.0  ;;  %v848_v48 = vpop.permute.xlu0 %847 }
 0x109   : > { %772 = vmatpush.msra.mxu2 %v681_v47 }
 0x10b   : > { %773 = vmatpush.msra.mxu2 %v680_v51 }
 0x10c   : > { %v853_v51 = vpop.permute.xlu1 %852 }
 0x10d   : > { %774 = vmatpush.msra.mxu2 %v679_v55 }
 0x10f   : > { %775 = vmatpush.msra.mxu2 %v678_v57 }
 0x111   : > { %776 = vmatpush.msra.mxu2 %v677_v59 }
 0x113   : > { %777 = vmatpush.msra.mxu2 %v676_v61 }
 0x115   : > { %778 = vmatpush.msra.mxu2 %v675_v62 }
 0x116   : > { %1045 = vmatmul.msk.f32.vlgmr.msra.gmra.mxu2 %vm568_vm10, %v683_v63 }
 0x11e   : > { %1046 = vmatmul.msk.f32.gmra.mxu2 %vm568_vm10, %v684_v0 }
 0x126   : > { %1047 = vmatmul.msk.f32.gmra.mxu2 %vm568_vm10, %v685_v1 }
 0x12e   : > { %1048 = vmatmul.msk.f32.gmra.mxu2 %vm568_vm10, %v686_v2  ;;  %v885_v2 = vpop.permute.xlu0 %884 }
 0x136   : > { %1049 = vmatmul.msk.f32.gmra.mxu2 %vm568_vm10, %v687_v3 }
 0x13e   : > { %1050 = vmatmul.msk.f32.gmra.mxu2 %vm568_vm10, %v688_v4  ;;  %v887_v4 = vperm.slane %v885_v2, 0 }
 0x146   : > { %1051 = vmatmul.msk.f32.gmra.mxu2 %vm568_vm10, %v689_v5 }
 0x14e   : > { %1052 = vmatmul.msk.f32.gmra.mxu2 %vm568_vm10, %v690_v6 }
 0x199   : > { %v780_v7 = vpop.f32.mrf.mxu2 }
 0x19a   : > { %v781_v24 = vadd.f32 %v780_v7, %v702_v9 }
 0x19c   : > { %v804_v29 = vmax.f32 %v781_v24, 0.0 }
 0x19e   : > { %v860_v37 = vmul.f32 %v823_v16, %v804_v29 }
 0x1a1   : > { %v783_v8 = vpop.f32.mrf.mxu2 }
 0x1a2   : > { %v784_v21 = vadd.f32 %v783_v8, %v707_v10 }
 0x1a4   : > { %v805_v26 = vmax.f32 %v784_v21, 0.0 }
 0x1a6   : > { %v861_v33 = vmul.f32 %v828_v17, %v805_v26 }
 0x1a8   : > { %v868_v42 = vadd.f32 %v861_v33, %v860_v37 }
 0x1a9   : > { %v786_v12 = vpop.f32.mrf.mxu2 }
 0x1aa   : > { %v787_v25 = vadd.f32 %v786_v12, %v712_v11 }
 0x1ac   : > { %v806_v30 = vmax.f32 %v787_v25, 0.0 }
 0x1ae   : > { %v862_v38 = vmul.f32 %v833_v19, %v806_v30 }
 0x1b0   : > { %v869_v45 = vadd.f32 %v868_v42, %v862_v38 }
 0x1b1   : > { %v789_v15 = vpop.f32.mrf.mxu2 }
 0x1b2   : > { %v790_v27 = vadd.f32 %v789_v15, %v717_v13 }
 0x1b4   : > { %v807_v34 = vmax.f32 %v790_v27, 0.0 }
 0x1b6   : > { %v863_v43 = vmul.f32 %v838_v22, %v807_v34 }
 0x1b8   : > { %v870_v49 = vadd.f32 %v869_v45, %v863_v43 }
 0x1b9   : > { %v792_v18 = vpop.f32.mrf.mxu2 }
 0x1ba   : > { %v793_v31 = vadd.f32 %v792_v18, %v722_v14 }
 0x1bc   : > { %v808_v39 = vmax.f32 %v793_v31, 0.0 }
 0x1be   : > { %v864_v46 = vmul.f32 %v843_v32, %v808_v39 }
 0x1c0   : > { %v871_v53 = vadd.f32 %v870_v49, %v864_v46 }
 0x1c1   : > { %v795_v23 = vpop.f32.mrf.mxu2 }
 0x1c2   : > { %v796_v35 = vadd.f32 %v795_v23, %v727_v20 }
 0x1c4   : > { %v809_v44 = vmax.f32 %v796_v35, 0.0 }
 0x1c6   : > { %v865_v50 = vmul.f32 %v848_v48, %v809_v44 }
 0x1c8   : > { %v872_v56 = vadd.f32 %v871_v53, %v865_v50 }
 0x1c9   : > { %v798_v36 = vpop.f32.mrf.mxu2 }
 0x1ca   : > { %v799_v40 = vadd.f32 %v798_v36, %v732_v28 }
 0x1cc   : > { %v810_v47 = vmax.f32 %v799_v40, 0.0 }
 0x1ce   : > { %v866_v54 = vmul.f32 %v853_v51, %v810_v47 }
 0x1d0   : > { %v873_v59 = vadd.f32 %v872_v56, %v866_v54 }
 0x1d1   : > { %v801_v52 = vpop.f32.mrf.mxu2 }
 0x1d2   : > { %v802_v55 = vadd.f32 %v801_v52, %v737_v41 }
 0x1d4   : > { %v811_v57 = vmax.f32 %v802_v55, 0.0 }
 0x1d6   : > { %v867_v60 = vmul.f32 %v858_v58, %v811_v57 }
 0x1d8   : > { %v874_v61 = vadd.f32 %v873_v59, %v867_v60 }
 0x1da   : > { %v875_v62 = vrot.slane %v874_v61, 4 }
 0x1dc   : > { %v876_v63 = vadd.f32 %v875_v62, %v874_v61 }
 0x1de   : > { %v877_v0 = vrot.slane %v876_v63, 2 }
 0x1e0   : > { %v878_v1 = vadd.f32 %v877_v0, %v876_v63 }
 0x1e2   : > { %v879_v3 = vrot.slane %v878_v1, 1 }
 0x1e4   : > { %v880_v5 = vadd.f32 %v879_v3, %v878_v1 }
 0x1e6   : > { %v888_v6 = vadd.f32 %v887_v4, %v880_v5 }
 0x1e8   : > { %v889_v7 = vmax.f32 %v888_v6, 0.0 }
 0x1ea   : > { %890 = vst [vmem:[%s354_s11] sm:$0x1] %v889_v7 }
 0x1eb   : > { %1224 = shalt.err (!%p1221_p13)
}
 0x1ec   : > { %1083 = dma.vmem_to_hbm [thread:$0]  (%p1368_p10), %s903_s13, 16, %s905_s14, %s892_s21  }
 0x1ed PF: > { %p1097_p0 = scmp.ge.s32.totalorder %s1267_s10, 2  ;;  %s916_s20 = sand.u32 1, %s1255_s29  }
 0x1ee   : > { %s917_s22 = scalar_lea.sflag [#allocation5], %s916_s20 }
 0x1ef   : > { %p1093_p4 = pnand %p1097_p0, %p1372_p11 }
 0x1f1   : > { %p1094_p5 = pneg %p1093_p4 }
 0x1f3   : > { %1250 = dma.done.wait (%p1094_p5), %s917_s22, 16  }
 0x1f4   : > { %1252 = vsyncadd (%p1094_p5), %s917_s22, 4294967280  ;;  %s1933_s23 = sld [smem:[#allocation12_spill]]  ;;  %p26_p7 = scmp.ge.s32.totalorder %s1344_s12, 6  }
 0x1f5   : > { %s1934_s29 = smov %s1259_s30  ;;  %s1935_s30 = smov %s1263_s9 }
 0x1f6   : > { %s1937_s10 = smov %s1344_s12  ;;  %28 = sbr.rel (!%p26_p7) target bundleno = 10 (0xa), region = 110 }
 0x1fa   : > { %s1936_s9 = smov %s1933_s23 }
 0x1fb   :  { %922 = vsyncpa [#allocation4], 1 }
 0x1fc   :  { %924 = vsyncpa [#allocation4 + $0x1], 1 }
 0x1fd   :  { %925 = vsyncpa [#allocation7], 1 }
 0x1fe   :  { %927 = vsyncpa [#allocation7 + $0x1], 1 }
 0x1ff   :  { %928 = vsyncpa [#allocation5], 1 }
 0x200   :  { %930 = vsyncpa [#allocation5 + $0x1], 1 }

</bundles_post_ra>
